<compile_context>
chip_gen: v7x
topology: tpu7x:2x2x1
jax: 0.10.0
libtpu: 0.0.40
codegen_flags: <defaults>
</compile_context>

<pallas_src>
import functools

import jax
import jax.numpy as jnp
import numpy as np
from jax.experimental import pallas as pl
from jax.experimental.pallas import tpu as pltpu

LANE = 128
EMB_DIS_DIM = 10  # the x[..., act_dim+1 : act_dim+11] slice width


def _round_up(n, m):
    return ((n + m - 1) // m) * m


def _tri_net_kernel(x_ref, wenc_ref, benc_ref, w1_ref, b1_ref, out_ref):
    # Fused tri-branch encoder: one row-permuted block-diagonal matmul over the
    # flattened input, native bf16 MXU with f32 accumulation, + bias, tanh.
    x = x_ref[...].astype(jnp.bfloat16)
    h = jnp.tanh(
        jnp.dot(x, wenc_ref[...], preferred_element_type=jnp.float32)
        + benc_ref[...])
    # fc1 + ReLU on the padded 128-lane hidden state (lane-dense stores).
    y = jnp.maximum(
        jnp.dot(h.astype(jnp.bfloat16), w1_ref[...],
                preferred_element_type=jnp.float32) + b1_ref[...],
        0.0)
    # F.normalize(p=2, dim=1, eps=1e-12):
    #   y / max(||y||, eps) == y * rsqrt(max(sum(y^2), eps^2)); rsqrt -> EUP.
    ss = jnp.sum(y * y, axis=1, keepdims=True)
    out_ref[...] = y * jax.lax.rsqrt(jnp.maximum(ss, 1e-24))


def make_params(key, act_feat, rank_feat, emb_feat, emb_dim, feature_dim):
    """Un-fused per-branch parameters (used by the pure-JAX reference)."""
    ks = jax.random.split(key, 8)

    def lin_w(k, fan_in, fan_out):
        bound = 1.0 / np.sqrt(fan_in)
        return jax.random.uniform(k, (fan_in, fan_out), jnp.float32, -bound, bound)

    def lin_b(k, fan_in, fan_out):
        bound = 1.0 / np.sqrt(fan_in)
        return jax.random.uniform(k, (fan_out,), jnp.float32, -bound, bound)

    return {
        "wa": lin_w(ks[0], act_feat, emb_dim),
        "ba": lin_b(ks[1], act_feat, emb_dim),
        "wr": lin_w(ks[2], rank_feat, emb_dim),
        "br": lin_b(ks[3], rank_feat, emb_dim),
        "we": lin_w(ks[4], emb_feat, emb_dim),
        "be": lin_b(ks[5], emb_feat, emb_dim),
        # fc1: nn.Linear(3*emb_dim, feature_dim) -- PyTorch init bound 1/sqrt(3E)
        "w1": lin_w(ks[6], 3 * emb_dim, feature_dim),
        "b1": lin_b(ks[7], 3 * emb_dim, feature_dim),
    }


def pack_params(params, *, C, L, D, act_dim, emb_dim, feature_dim):
    """Pack per-branch params into a row-permuted block-diagonal bf16 weight.

    Rows of `wenc` follow the memory order of x.reshape(B, C*L*D); the fa/fr/fe
    slice+concat of the PyTorch forward is a fixed column permutation of that
    flattening, so it is folded into the weight layout (no runtime gather).
    """
    k = C * L * D
    e_pad = _round_up(3 * emb_dim, LANE)      # 96  -> 128
    n_pad = _round_up(feature_dim, LANE)      # 64  -> 128

    wa = np.asarray(params["wa"])
    wr = np.asarray(params["wr"])
    we = np.asarray(params["we"])

    wenc = np.zeros((k, e_pad), np.float32)
    for cl in range(C * L):
        base = cl * D
        # activation slice  x[..., :act_dim]          -> branch 0 cols [0, E)
        wenc[base:base + act_dim, 0:emb_dim] = \
            wa[cl * act_dim:(cl + 1) * act_dim]
        # rank slice        x[..., act_dim]           -> branch 1 cols [E, 2E)
        wenc[base + act_dim, emb_dim:2 * emb_dim] = wr[cl]
        # emb-distance      x[..., act_dim+1:act_dim+11] -> branch 2 cols [2E, 3E)
        wenc[base + act_dim + 1:base + act_dim + 1 + EMB_DIS_DIM,
             2 * emb_dim:3 * emb_dim] = \
            we[cl * EMB_DIS_DIM:(cl + 1) * EMB_DIS_DIM]
        # any x columns beyond act_dim+11 (unused by the module) stay zero rows.

    benc = np.zeros((1, e_pad), np.float32)
    benc[0, 0:3 * emb_dim] = np.concatenate(
        [np.asarray(params["ba"]), np.asarray(params["br"]),
         np.asarray(params["be"])])

    w1 = np.zeros((e_pad, n_pad), np.float32)
    w1[:3 * emb_dim, :feature_dim] = np.asarray(params["w1"])
    b1 = np.zeros((1, n_pad), np.float32)
    b1[0, :feature_dim] = np.asarray(params["b1"])

    return {"wenc": jnp.asarray(wenc, jnp.bfloat16),
            "benc": jnp.asarray(benc, jnp.float32),
            "w1": jnp.asarray(w1, jnp.bfloat16),
            "b1": jnp.asarray(b1, jnp.float32)}


@functools.partial(jax.jit, static_argnames=("feature_dim",))
def tri_net_forward(x, wenc, benc, w1, b1, *, feature_dim):
    B = x.shape[0]
    k = wenc.shape[0]
    n_pad = b1.shape[1]
    # Only remaining host-side op: a free contiguous reshape (no slice/concat/pad).
    x_flat = x.reshape(B, -1).astype(jnp.float32)
    assert x_flat.shape[1] == k, "packed weight does not match x layout"

    vspec = pl.BlockSpec(memory_space=pltpu.MemorySpace.VMEM)
    cost = pl.CostEstimate(
        flops=2 * B * k * n_pad + 2 * B * n_pad * n_pad,
        transcendentals=B * n_pad + B,                      # tanh + rsqrt
        bytes_accessed=(x_flat.size * 4 + wenc.size * 2 + w1.size * 2
                        + benc.size * 4 + b1.size * 4 + B * n_pad * 4))

    out_pad = pl.pallas_call(
        _tri_net_kernel,
        out_shape=jax.ShapeDtypeStruct((B, n_pad), jnp.float32),
        in_specs=[vspec, vspec, vspec, vspec, vspec],
        out_specs=vspec,
        cost_estimate=cost,
    )(x_flat, wenc, benc, w1, b1)
    # Keep the kernel store lane-dense (128 wide); slice to feature_dim outside.
    return out_pad[:, :feature_dim]


def tri_net_reference(x, act_dim, params):
    # Pure-JAX f32 reference (per-branch, un-fused), precision pinned locally.
    B = x.shape[0]
    hp = jax.lax.Precision.HIGHEST
    fa = x[:, :, :, :act_dim].reshape(B, -1)
    fr = x[:, :, :, act_dim:act_dim + 1].reshape(B, -1)
    fe = x[:, :, :, act_dim + 1:act_dim + 11].reshape(B, -1)
    x1 = jnp.tanh(jnp.dot(fa, params["wa"], precision=hp) + params["ba"])
    x2 = jnp.tanh(jnp.dot(fr, params["wr"], precision=hp) + params["br"])
    x3 = jnp.tanh(jnp.dot(fe, params["we"], precision=hp) + params["be"])
    cat = jnp.concatenate([x1, x2, x3], axis=1)
    y = jnp.maximum(jnp.dot(cat, params["w1"], precision=hp) + params["b1"], 0.0)
    norm = jnp.sqrt(jnp.sum(y * y, axis=1, keepdims=True))
    return y / jnp.maximum(norm, 1e-12)


if __name__ == "__main__":
    B, C, L = 8, 4, 8
    act_dim = 16
    emb_dim = 32
    feature_dim = 64
    D = act_dim + 11          # activation slice + rank (1) + emb-distance (10)

    act_feat = C * L * act_dim   # 512
    rank_feat = C * L * 1        # 32
    emb_feat = C * L * EMB_DIS_DIM  # 320

    key = jax.random.PRNGKey(0)
    kx, kp = jax.random.split(key)
    x = jax.random.normal(kx, (B, C, L, D), dtype=jnp.float32)

    params = make_params(kp, act_feat, rank_feat, emb_feat, emb_dim, feature_dim)
    packed = pack_params(params, C=C, L=L, D=D, act_dim=act_dim,
                         emb_dim=emb_dim, feature_dim=feature_dim)

    out = tri_net_forward(x, packed["wenc"], packed["benc"], packed["w1"],
                          packed["b1"], feature_dim=feature_dim)
    out = jax.block_until_ready(out)

    ref = tri_net_reference(x, act_dim, params)
    # bf16 weight storage + bf16 MXU passes vs. f32 HIGHEST reference: the
    # review anticipated ~1e-2 relative on tanh-saturated values.
    np.testing.assert_allclose(np.asarray(out), np.asarray(ref),
                               rtol=2e-2, atol=2e-2)

    assert out.shape == (B, feature_dim)
    print("KERNEL_OK")
</pallas_src>

<mosaic_0001>
module attributes {stable_mosaic.version = 11 : i64} {
  func.func @_tri_net_kernel(%arg0: memref<8x864xf32, #tpu.memory_space<vmem>>, %arg1: memref<864x128xbf16, #tpu.memory_space<vmem>>, %arg2: memref<1x128xf32, #tpu.memory_space<vmem>>, %arg3: memref<128x128xbf16, #tpu.memory_space<vmem>>, %arg4: memref<1x128xf32, #tpu.memory_space<vmem>>, %arg5: memref<8x128xf32, #tpu.memory_space<vmem>>) attributes {dimension_semantics = [], scalar_prefetch = 0 : i64, scratch_operands = 0 : i64, tpu.core_type = #tpu.core_type<tc>} {
    %c0 = arith.constant 0 : index
    %c0_0 = arith.constant 0 : index
    %0 = vector.load %arg0[%c0, %c0_0] : memref<8x864xf32, #tpu.memory_space<vmem>>, vector<8x864xf32>
    %1 = arith.truncf %0 : vector<8x864xf32> to vector<8x864xbf16>
    %c0_1 = arith.constant 0 : index
    %c0_2 = arith.constant 0 : index
    %2 = vector.load %arg1[%c0_1, %c0_2] : memref<864x128xbf16, #tpu.memory_space<vmem>>, vector<864x128xbf16>
    %cst = arith.constant dense<0.000000e+00> : vector<8x128xf32>
    %3 = tpu.matmul %1, %2, %cst {dimension_numbers = #tpu.dot_dimension_numbers<[1], [0], [0], [1], [0, 0, 1, 1], [], []>} : vector<8x864xbf16>, vector<864x128xbf16>, vector<8x128xf32> -> vector<8x128xf32>
    %c0_3 = arith.constant 0 : index
    %c0_4 = arith.constant 0 : index
    %4 = vector.load %arg2[%c0_3, %c0_4] : memref<1x128xf32, #tpu.memory_space<vmem>>, vector<1x128xf32>
    %5 = vector.broadcast %4 : vector<1x128xf32> to vector<8x128xf32>
    %6 = arith.addf %3, %5 : vector<8x128xf32>
    %7 = math.tanh %6 : vector<8x128xf32>
    %8 = arith.truncf %7 : vector<8x128xf32> to vector<8x128xbf16>
    %c0_5 = arith.constant 0 : index
    %c0_6 = arith.constant 0 : index
    %9 = vector.load %arg3[%c0_5, %c0_6] : memref<128x128xbf16, #tpu.memory_space<vmem>>, vector<128x128xbf16>
    %cst_7 = arith.constant dense<0.000000e+00> : vector<8x128xf32>
    %10 = tpu.matmul %8, %9, %cst_7 {dimension_numbers = #tpu.dot_dimension_numbers<[1], [0], [0], [1], [0, 0, 1, 1], [], []>} : vector<8x128xbf16>, vector<128x128xbf16>, vector<8x128xf32> -> vector<8x128xf32>
    %c0_8 = arith.constant 0 : index
    %c0_9 = arith.constant 0 : index
    %11 = vector.load %arg4[%c0_8, %c0_9] : memref<1x128xf32, #tpu.memory_space<vmem>>, vector<1x128xf32>
    %12 = vector.broadcast %11 : vector<1x128xf32> to vector<8x128xf32>
    %13 = arith.addf %10, %12 : vector<8x128xf32>
    %cst_10 = arith.constant 0.000000e+00 : f32
    %14 = vector.broadcast %cst_10 : f32 to vector<8x128xf32>
    %15 = arith.maximumf %13, %14 : vector<8x128xf32>
    %16 = arith.mulf %15, %15 : vector<8x128xf32>
    %cst_11 = arith.constant dense<0.000000e+00> : vector<8xf32>
    %17 = vector.multi_reduction <add>, %16, %cst_11 [1] : vector<8x128xf32> to vector<8xf32>
    %18 = vector.shape_cast %17 : vector<8xf32> to vector<8x1xf32>
    %cst_12 = arith.constant 1.000000e-24 : f32
    %19 = vector.broadcast %cst_12 : f32 to vector<8x1xf32>
    %20 = arith.maximumf %18, %19 : vector<8x1xf32>
    %21 = math.rsqrt %20 : vector<8x1xf32>
    %22 = vector.broadcast %21 : vector<8x1xf32> to vector<8x128xf32>
    %23 = arith.mulf %15, %22 : vector<8x128xf32>
    %c0_13 = arith.constant 0 : index
    %c0_14 = arith.constant 0 : index
    %24 = vector.load %arg5[%c0_13, %c0_14] : memref<8x128xf32, #tpu.memory_space<vmem>>, vector<8x128xf32>
    tpu.vector_store %arg5[%c0_13, %c0_14], %23 {strides = array<i32>} : memref<8x128xf32, #tpu.memory_space<vmem>>, vector<8x128xf32>,
    return
  }
}

</mosaic_0001>

<bundles_post_ra>
// kernel: tri_net_forward.1
= control target key start
LH: loop header
LB: loop body
LE: loop exit
PB: predicated region body
PF: predicated region fallthrough
CT: control target
= control target key end

     0   :  { %10 = vsyncpa [#allocation3], 0  ;;  %s1221_s0 = inlined_call_operand.vmem [shape: f32[8,864], index: 0, kind: input, shape index: {}]   ;;  %s1222_s1 = inlined_call_operand.hbm [shape: bf16[864,128], index: 1, kind: input, shape index: {}]   ;;  %s1223_s2 = inlined_call_operand.vmem [shape: f32[1,128], index: 2, kind: input, shape index: {}]   ;;  %s1224_s3 = inlined_call_operand.vmem [shape: bf16[128,128], index: 3, kind: input, shape index: {}]   ;;  %s1225_s4 = inlined_call_operand.vmem [shape: f32[1,128], index: 4, kind: input, shape index: {}]   ;;  %s1226_s5 = inlined_call_operand.hbm [shape: f32[8,128], index: 5, kind: output, shape index: {}]  }
   0x1   :  { %11 = vsyncpa [#allocation4], 0  ;;  %s1092_s18 = smov [#allocation2]   ;;  %s1044_s22 = scalar_lea.hbm %s1222_s1, 6912 }
   0x2   :  { %s19_s19 = sshll.u32 %s1092_s18, 4  ;;  %p1045_p0 = scmp.ne.s32.totalorder %s1222_s1, %s1044_s22  ;;  %s20_s19 = int_to_ptr.vmem [resolvable:$true] %s19_s19 }
   0x3   :  { %p1048_p1 = scmp.lt.u32.totalorder %s1044_s22, %s1222_s1 }
   0x5   :  { %p1050_p2 = pnand %p1048_p1, %p1045_p0 }
   0x7   :  { %1053 = shalt.err (!%p1050_p2)
}
   0x8   :  { %s1054_s27 = scalar_lea.vmem %s20_s19, 6912  ;;  %p1059_p4 = scmp.lt.s32.totalorder %s20_s19, %s20_s19 }
   0x9   :  { %p1055_p3 = scmp.ne.s32.totalorder %s20_s19, %s1054_s27  ;;  %p1060_p5 = scmp.lt.s32.totalorder %s1054_s27, %s1054_s27 }
   0xb   :  { %p1061_p6 = por %p1060_p5, %p1059_p4 }
   0xd   :  { %p1062_p7 = pnand %p1061_p6, %p1055_p3 }
   0xf   :  { %1065 = shalt.err (!%p1062_p7)
}
  0x10   :  { %s1093_s28 = smov 64   ;;  %s1094_s29 = smov 4  }
  0x11   :  { %25 = dma.hbm_to_vmem [thread:$0]  %s1222_s1, 6912, %s20_s19, [#allocation3], %s1093_s28, %s1093_s28, %s1094_s29  }
  0x12   :  { %1088 = dma.done.wait [#allocation3], 6912  }
  0x13   :  { %1089 = vsyncadd [#allocation3], 4294960384  ;;  %v978_v0 = vld [vmem:[#allocation2 + $0x40] sm:$0xff]   ;;  %v982_v4 = vld [vmem:[#allocation2 + $0x48] sm:$0xff]   ;;  %v1095_v44 = vmov 0.0   ;;  %vm1096_vm0 = vmmov 0  }
  0x14   :  { %v979_v1 = vld [vmem:[#allocation2] sm:$0xff]   ;;  %854 = vmatprep.subr.bf16.mxu0 %v978_v0  ;;  %v983_v5 = vld [vmem:[#allocation2 + $0x8] sm:$0xff]   ;;  %v986_v8 = vld [vmem:[#allocation2 + $0x50] sm:$0xff]   ;;  %vm489_vm1 = vcmask 785408   ;;  %s1097_s11 = smov [#allocation5]  }
  0x15   :  { %v980_v2 = vld [vmem:[#allocation2 + $0xc0] sm:$0xff]   ;;  %855 = vmatpush3.bf16.msra.mxu0 %v979_v1  ;;  %v984_v6 = vld [vmem:[#allocation2 + $0xc8] sm:$0xff]   ;;  %v987_v9 = vld [vmem:[#allocation2 + $0x10] sm:$0xff]   ;;  %s780_s12 = sshll.u32 %s1097_s11, 4  ;;  %s781_s12 = int_to_ptr.vmem [resolvable:$true] %s780_s12 }
  0x16   :  { %v981_v3 = vld [vmem:[#allocation2 + $0x80] sm:$0xff]   ;;  %876 = vmatprep.subr.bf16.mxu1 %v980_v2  ;;  %856 = vmatprep.subr.bf16.mxu0 %v982_v4  ;;  %v985_v7 = vld [vmem:[#allocation2 + $0x88] sm:$0xff]   ;;  %v988_v10 = vld [vmem:[#allocation2 + $0xd0] sm:$0xff]   ;;  %s1066_s13 = scalar_lea.vmem %s781_s12, 128  ;;  %p1071_p9 = scmp.lt.s32.totalorder %s781_s12, %s781_s12 }
  0x17   :  { %877 = vmatpush3.bf16.msra.mxu1 %v981_v3  ;;  %v989_v11 = vld [vmem:[#allocation2 + $0x90] sm:$0xff]   ;;  %v990_v12 = vld [vmem:[#allocation2 + $0x58] sm:$0xff]   ;;  %v994_v16 = vld [vmem:[#allocation2 + $0x60] sm:$0xff]   ;;  %p1067_p8 = scmp.ne.s32.totalorder %s781_s12, %s1066_s13  ;;  %p1072_p10 = scmp.lt.s32.totalorder %s1066_s13, %s1066_s13 }
  0x18   :  { %878 = vmatprep.subr.bf16.mxu1 %v984_v6  ;;  %v991_v13 = vld [vmem:[#allocation2 + $0x18] sm:$0xff]   ;;  %v995_v17 = vld [vmem:[#allocation2 + $0x20] sm:$0xff]   ;;  %v998_v20 = vld [vmem:[#allocation2 + $0x68] sm:$0xff]  }
  0x19   :  { %857 = vmatpush3.bf16.msra.mxu0 %v983_v5  ;;  %v992_v14 = vld [vmem:[#allocation2 + $0xd8] sm:$0xff]   ;;  %v996_v18 = vld [vmem:[#allocation2 + $0xe0] sm:$0xff]   ;;  %v999_v21 = vld [vmem:[#allocation2 + $0x28] sm:$0xff]   ;;  %p1073_p11 = por %p1072_p10, %p1071_p9 }
  0x1a   :  { %858 = vmatprep.subr.bf16.mxu0 %v986_v8  ;;  %v993_v15 = vld [vmem:[#allocation2 + $0x98] sm:$0xff]   ;;  %v997_v19 = vld [vmem:[#allocation2 + $0xa0] sm:$0xff]   ;;  %v1000_v22 = vld [vmem:[#allocation2 + $0xe8] sm:$0xff]  }
  0x1b   :  { %879 = vmatpush3.bf16.msra.mxu1 %v985_v7  ;;  %v1001_v23 = vld [vmem:[#allocation2 + $0xa8] sm:$0xff]   ;;  %v1002_v24 = vld [vmem:[#allocation2 + $0x70] sm:$0xff]   ;;  %v1006_v28 = vld [vmem:[#allocation2 + $0x78] sm:$0xff]   ;;  %p1074_p12 = pnand %p1073_p11, %p1067_p8 }
  0x1c   :  { %880 = vmatprep.subr.bf16.mxu1 %v988_v10  ;;  %v1003_v25 = vld [vmem:[#allocation2 + $0x30] sm:$0xff]   ;;  %v1007_v29 = vld [vmem:[#allocation2 + $0x38] sm:$0xff]   ;;  %v37_v31 = vld [vmem:[%s1221_s0 + $0x8] sm:$0xff] }
  0x1d   :  { %859 = vmatpush3.bf16.msra.mxu0 %v987_v9  ;;  %v1004_v26 = vld [vmem:[#allocation2 + $0xf0] sm:$0xff]   ;;  %v1008_v30 = vld [vmem:[#allocation2 + $0xf8] sm:$0xff]   ;;  %v44_v32 = vpack.c.bf16 %v37_v31, %v37_v31  ;;  %v36_v34 = vld [vmem:[%s1221_s0] sm:$0xff] }
  0x1e   :  { %860 = vmatprep.subr.bf16.mxu0 %v990_v12  ;;  %v1005_v27 = vld [vmem:[#allocation2 + $0xb0] sm:$0xff]   ;;  %v1009_v33 = vld [vmem:[#allocation2 + $0xb8] sm:$0xff]   ;;  %v43_v35 = vpack.c.bf16 %v36_v34, %v36_v34  ;;  %v1010_v36 = vld [vmem:[#allocation2 + $0x140] sm:$0xff]  }
  0x1f   :  { %881 = vmatpush3.bf16.msra.mxu1 %v989_v11  ;;  %v39_v37 = vld [vmem:[%s1221_s0 + $0x18] sm:$0xff]  ;;  %525 = vmatprep.mubr.bf16.mxu0 %v44_v32  ;;  %v1011_v39 = vld [vmem:[#allocation2 + $0x100] sm:$0xff]   ;;  %v38_v40 = vld [vmem:[%s1221_s0 + $0x10] sm:$0xff] }
  0x20   :  { %882 = vmatprep.subr.bf16.mxu1 %v992_v14  ;;  %v46_v38 = vpack.c.bf16 %v39_v37, %v39_v37  ;;  %v45_v41 = vpack.c.bf16 %v38_v40, %v38_v40  ;;  %v1012_v42 = vld [vmem:[#allocation2 + $0x148] sm:$0xff]   ;;  %v1014_v45 = vld [vmem:[#allocation2 + $0x150] sm:$0xff]   ;;  %v1016_v47 = vld [vmem:[#allocation2 + $0x180] sm:$0xff]  }
  0x21   :  { %861 = vmatpush3.bf16.msra.mxu0 %v991_v13  ;;  %v1013_v43 = vld [vmem:[#allocation2 + $0x108] sm:$0xff]   ;;  %v1015_v46 = vld [vmem:[#allocation2 + $0x110] sm:$0xff]   ;;  %v1017_v48 = vld [vmem:[#allocation2 + $0x158] sm:$0xff]  }
  0x22   :  { %862 = vmatprep.subr.bf16.mxu0 %v994_v16  ;;  %565 = vmatprep.mubr.bf16.mxu1 %v46_v38  ;;  %v1019_v49 = vld [vmem:[#allocation2 + $0x188] sm:$0xff]   ;;  %v1018_v50 = vld [vmem:[#allocation2 + $0x118] sm:$0xff]   ;;  %v1020_v51 = vld [vmem:[#allocation2 + $0x160] sm:$0xff]  }
  0x23   :  { %883 = vmatpush3.bf16.msra.mxu1 %v993_v15  ;;  %v1022_v52 = vld [vmem:[#allocation2 + $0x190] sm:$0xff]   ;;  %v1021_v53 = vld [vmem:[#allocation2 + $0x120] sm:$0xff]   ;;  %v1023_v54 = vld [vmem:[#allocation2 + $0x168] sm:$0xff]  }
  0x24   :  { %884 = vmatprep.subr.bf16.mxu1 %v996_v18  ;;  %v1025_v55 = vld [vmem:[#allocation2 + $0x198] sm:$0xff]   ;;  %v1024_v56 = vld [vmem:[#allocation2 + $0x128] sm:$0xff]   ;;  %v1026_v57 = vld [vmem:[#allocation2 + $0x170] sm:$0xff]  }
  0x25   :  { %863 = vmatpush3.bf16.msra.mxu0 %v995_v17  ;;  %v1028_v58 = vld [vmem:[#allocation2 + $0x1a0] sm:$0xff]   ;;  %v41_v59 = vld [vmem:[%s1221_s0 + $0x28] sm:$0xff]  ;;  %v1027_v60 = vld [vmem:[#allocation2 + $0x130] sm:$0xff]  }
  0x26   :  { %864 = vmatprep.subr.bf16.mxu0 %v998_v20  ;;  %v1029_v61 = vld [vmem:[#allocation2 + $0x178] sm:$0xff]   ;;  %v48_v62 = vpack.c.bf16 %v41_v59, %v41_v59  ;;  %v1031_v63 = vld [vmem:[#allocation2 + $0x1a8] sm:$0xff]   ;;  %v42_v0 = vld [vmem:[%s1221_s0 + $0x30] sm:$0xff] }
  0x27   :  { %885 = vmatpush3.bf16.msra.mxu1 %v997_v19  ;;  %v1030_v1 = vld [vmem:[#allocation2 + $0x138] sm:$0xff]   ;;  %v40_v2 = vld [vmem:[%s1221_s0 + $0x20] sm:$0xff]  ;;  %v49_v3 = vpack.c.bf16 %v42_v0, %v42_v0  ;;  %v1033_v6 = vld [vmem:[%s1224_s3 + $0x8] sm:$0xff]  }
  0x28   :  { %886 = vmatprep.subr.bf16.mxu1 %v1000_v22  ;;  %v47_v4 = vpack.c.bf16 %v40_v2, %v40_v2  ;;  %v1032_v5 = vld [vmem:[%s1224_s3] sm:$0xff]   ;;  %v1034_v7 = vld [vmem:[%s1224_s3 + $0x10] sm:$0xff]   ;;  %v1035_v8 = vld [vmem:[%s1224_s3 + $0x18] sm:$0xff]  }
  0x29   :  { %865 = vmatpush3.bf16.msra.mxu0 %v999_v21  ;;  %v1036_v9 = vld [vmem:[%s1224_s3 + $0x20] sm:$0xff]   ;;  %v1037_v10 = vld [vmem:[%s1224_s3 + $0x28] sm:$0xff]   ;;  %v1038_v11 = vld [vmem:[%s1224_s3 + $0x30] sm:$0xff]  }
  0x2a   :  { %866 = vmatprep.subr.bf16.mxu0 %v1002_v24  ;;  %v1039_v12 = vld [vmem:[%s1224_s3 + $0x38] sm:$0xff]   ;;  %v789_v14 = vld [vmem:[%s1223_s2] ss:$0 sm:$0xff] }
  0x2b   :  { %887 = vmatpush3.bf16.msra.mxu1 %v1001_v23 }
  0x2c   :  { %888 = vmatprep.subr.bf16.mxu1 %v1004_v26 }
  0x2d   :  { %867 = vmatpush3.bf16.msra.mxu0 %v1003_v25 }
  0x2e   :  { %868 = vmatprep.subr.bf16.mxu0 %v1006_v28 }
  0x2f   :  { %889 = vmatpush3.bf16.msra.mxu1 %v1005_v27 }
  0x30   :  { %890 = vmatprep.subr.bf16.mxu1 %v1008_v30 }
  0x31   :  { %869 = vmatpush3.bf16.msra.mxu0 %v1007_v29 }
  0x32   :  { %898 = vmatprep.subr.bf16.mxu0 %v1010_v36 }
  0x33   :  { %891 = vmatpush3.bf16.msra.mxu1 %v1009_v33 }
  0x34   :  { %526 = vmatmul.mubr.bf16.vlgmr.msra.gmra.mrb[0].mxu0 %v43_v35  ;;  %936 = vmatprep.subr.bf16.mxu1 %v1095_v44 }
  0x35   :  { %899 = vmatpush3.bf16.msra.mxu0 %v1011_v39  ;;  %605 = vmatprep.mubr.bf16.mxu0 %v48_v62  ;;  %v845_v39 = vld [vmem:[%s1225_s4] ss:$0 sm:$0xff] }
  0x36   :  { %566 = vmatmul.mubr.bf16.vlgmr.msra.gmra.mrb[0].mxu1 %v45_v41  ;;  %900 = vmatprep.subr.bf16.mxu0 %v1012_v42 }
  0x37   :  { %948 = vmatprep.mubr.msk.bf16.mxu1 %vm1096_vm0, %v1095_v44  ;;  %937 = vmatpush3.bf16.msra.mxu1 %v1016_v47 }
  0x38   :  { %938 = vmatprep.subr.bf16.mxu1 %v1095_v44 }
  0x39   :  { %901 = vmatpush3.bf16.msra.mxu0 %v1013_v43 }
  0x3a   :  { %902 = vmatprep.subr.bf16.mxu0 %v1014_v45 }
  0x3b   :  { %939 = vmatpush3.bf16.msra.mxu1 %v1019_v49 }
  0x3c   :  { %940 = vmatprep.subr.bf16.mxu1 %v1095_v44 }
  0x3d   :  { %903 = vmatpush3.bf16.msra.mxu0 %v1015_v46 }
  0x3e   :  { %904 = vmatprep.subr.bf16.mxu0 %v1017_v48 }
  0x3f   :  { %941 = vmatpush3.bf16.msra.mxu1 %v1022_v52 }
  0x40   :  { %942 = vmatprep.subr.bf16.mxu1 %v1095_v44 }
  0x41   :  { %905 = vmatpush3.bf16.msra.mxu0 %v1018_v50 }
  0x42   :  { %906 = vmatprep.subr.bf16.mxu0 %v1020_v51 }
  0x43   :  { %943 = vmatpush3.bf16.msra.mxu1 %v1025_v55 }
  0x44   :  { %944 = vmatprep.subr.bf16.mxu1 %v1095_v44 }
  0x45   :  { %907 = vmatpush3.bf16.msra.mxu0 %v1021_v53 }
  0x46   :  { %908 = vmatprep.subr.bf16.mxu0 %v1023_v54 }
  0x47   :  { %945 = vmatpush3.bf16.msra.mxu1 %v1028_v58 }
  0x48   :  { %946 = vmatprep.subr.bf16.mxu1 %v1095_v44 }
  0x49   :  { %909 = vmatpush3.bf16.msra.mxu0 %v1024_v56 }
  0x4a   :  { %910 = vmatprep.subr.bf16.mxu0 %v1026_v57 }
  0x4b   :  { %947 = vmatpush3.bf16.msra.mxu1 %v1031_v63 }
  0x4c   :  { %952 = vmatprep.subr.bf16.mxu1 %v1095_v44 }
  0x4d   :  { %911 = vmatpush3.bf16.msra.mxu0 %v1027_v60 }
  0x4e   :  { %912 = vmatprep.subr.bf16.mxu0 %v1029_v61  ;;  %949 = vmatmul.mubr.msk.bf16.vlgmr.msra.gmra.mrb[4].mxu1 %vm489_vm1, %v49_v3 }
  0x4f   :  { %968 = vmatprep.mubr.msk.bf16.mxu1 %vm1096_vm0, %v1095_v44  ;;  %953 = vmatpush3.bf16.msra.mxu1 %v1032_v5 }
  0x50   :  { %954 = vmatprep.subr.bf16.mxu1 %v1095_v44 }
  0x51   :  { %913 = vmatpush3.bf16.msra.mxu0 %v1030_v1 }
  0x53   :  { %955 = vmatpush3.bf16.msra.mxu1 %v1033_v6 }
  0x54   :  { %606 = vmatmul.mubr.bf16.vlgmr.msra.gmra.mrb[4].mxu0 %v47_v4  ;;  %956 = vmatprep.subr.bf16.mxu1 %v1095_v44 }
  0x57   :  { %957 = vmatpush3.bf16.msra.mxu1 %v1034_v7 }
  0x58   :  { %958 = vmatprep.subr.bf16.mxu1 %v1095_v44 }
  0x5b   :  { %959 = vmatpush3.bf16.msra.mxu1 %v1035_v8 }
  0x5c   :  { %960 = vmatprep.subr.bf16.mxu1 %v1095_v44 }
  0x5f   :  { %961 = vmatpush3.bf16.msra.mxu1 %v1036_v9 }
  0x60   :  { %962 = vmatprep.subr.bf16.mxu1 %v1095_v44 }
  0x63   :  { %963 = vmatpush3.bf16.msra.mxu1 %v1037_v10 }
  0x64   :  { %964 = vmatprep.subr.bf16.mxu1 %v1095_v44 }
  0x67   :  { %965 = vmatpush3.bf16.msra.mxu1 %v1038_v11 }
  0x68   :  { %966 = vmatprep.subr.bf16.mxu1 %v1095_v44 }
  0x6b   :  { %967 = vmatpush3.bf16.msra.mxu1 %v1039_v12 }
 0x107   :  { %v870_v13 = vpop.f32.mrb[0].mxu0 }
 0x108   :  { %v871_v15 = vpop.f32.mrb[1].mxu0 }
 0x109   :  { %v872_v16 = vadd.f32 %v871_v15, %v870_v13  ;;  %v873_v17 = vpop.f32.mrb[2].mxu0  ;;  %v892_v18 = vpop.f32.mrb[0].mxu1 }
 0x10a   :  { %v874_v19 = vpop.f32.mrb[3].mxu0  ;;  %v893_v21 = vpop.f32.mrb[1].mxu1 }
 0x10b   :  { %v528_v20 = vadd.f32 %v872_v16, %v789_v14  ;;  %v894_v22 = vadd.f32 %v893_v21, %v892_v18  ;;  %v895_v23 = vpop.f32.mrb[2].mxu1 }
 0x10c   :  { %v896_v24 = vpop.f32.mrb[3].mxu1 }
 0x10d   :  { %v568_v25 = vadd.f32 %v894_v22, %v528_v20 }
 0x121   :  { %v647_v26 = vpop.f32.mrb[4].mxu1 }
 0x122   :  { %v950_v27 = vpop.f32.mrb[5].mxu1 }
 0x123   :  { %v650_v29 = vpop.f32.mrb[6].mxu1 }
 0x124   :  { %v951_v31 = vpop.f32.mrb[7].mxu1 }
 0x127   :  { %v914_v28 = vpop.f32.mrb[4].mxu0 }
 0x128   :  { %v915_v30 = vpop.f32.mrb[5].mxu0 }
 0x129   :  { %v916_v32 = vadd.f32 %v915_v30, %v914_v28  ;;  %v917_v33 = vpop.f32.mrb[6].mxu0 }
 0x12a   :  { %v918_v34 = vpop.f32.mrb[7].mxu0 }
 0x12b   :  { %v608_v35 = vadd.f32 %v916_v32, %v568_v25 }
 0x12d   :  { %v648_v36 = vadd.f32 %v647_v26, %v608_v35 }
 0x12f   :  { %1040 = vtanh.f32 %v648_v36 }
 0x139   :  { %v1041_v37 = vpop.eup %1040 }
 0x13a   :  { %v654_v38 = vpack.c.bf16 %v1041_v37, %v1041_v37 }
 0x13c   :  { %969 = vmatmul.mubr.bf16.vlgmr.msra.gmra.mrb[8].mxu1 %v654_v38 }
 0x20f   :  { %v760_v40 = vpop.f32.mrb[8].mxu1 }
 0x210   :  { %v761_v41 = vadd.f32 %v845_v39, %v760_v40  ;;  %v970_v42 = vpop.f32.mrb[9].mxu1 }
 0x211   :  { %v763_v43 = vpop.f32.mrb[10].mxu1 }
 0x212   :  { %v766_v44 = vmax.f32 %v761_v41, 0.0  ;;  %v971_v45 = vpop.f32.mrb[11].mxu1 }
 0x214   :  { %v767_v46 = vmul.f32 %v766_v44, %v766_v44 }
 0x216   :  { %768 = vadd.xlane.f32.xlu0 %v767_v46 }
 0x2a3   :  { %v769_v47 = vpop.xlane.xlu0 %768 }
 0x2a4   :  { %v770_v48 = vmax.f32 %v769_v47, 1e-24 }
 0x2a6   :  { %1042 = vrsqrt.f32 %v770_v48 }
 0x2b0   :  { %v1043_v49 = vpop.eup %1042 }
 0x2b1   :  { %v772_v50 = vmul.f32 %v1043_v49, %v766_v44 }
 0x2b3   :  { %773 = vst [vmem:[#allocation5] sm:$0xff] %v772_v50 }
 0x2b4   :  { %1077 = shalt.err (!%p1074_p12)
}
 0x2b5   :  { %s1078_s15 = scalar_lea.hbm %s1226_s5, 128 }
 0x2b6   :  { %p1079_p13 = scmp.ne.s32.totalorder %s1226_s5, %s1078_s15  ;;  %p1082_p0 = scmp.lt.u32.totalorder %s1078_s15, %s1226_s5 }
 0x2b8   :  { %p1084_p1 = pnand %p1082_p0, %p1079_p13 }
 0x2ba   :  { %1087 = shalt.err (!%p1084_p1)
}
 0x2bb   :  { %783 = dma.vmem_to_hbm [thread:$0]  %s781_s12, 128, %s1226_s5, [#allocation4]  }
 0x2bc   :  { %1090 = dma.done.wait [#allocation4], 128  }
 0x2bd   :  { %1091 = vsyncadd [#allocation4], 4294967168 }
 0x2be   :  { %787 = vsyncpa [#allocation3], 1 }
 0x2bf   :  { %788 = vsyncpa [#allocation4], 1 }

</bundles_post_ra>
